<compile_context>
chip_gen: v7x
topology: tpu7x:2x2x1
jax: 0.10.0
libtpu: 0.0.40
codegen_flags: <defaults>
</compile_context>

<pallas_src>
import math
from functools import partial, lru_cache

import jax
import jax.numpy as jnp
from jax.experimental import pallas as pl
from jax.experimental.pallas import tpu as pltpu


# ----------------------------------------------------------------------------
# Hardware-aware configuration
# ----------------------------------------------------------------------------
@lru_cache(maxsize=1)
def _hw_config():
    vmem_cap = None
    try:
        info = pltpu.get_tpu_info()
        vmem_cap = int(getattr(info, "vmem_capacity_bytes"))
    except Exception:
        vmem_cap = None
    if not vmem_cap:
        try:
            kind = jax.devices()[0].device_kind.lower()
        except Exception:
            kind = ""
        vmem_cap = (64 if "v7" in kind else 128) * 1024 * 1024
    small_vmem = vmem_cap <= 96 * 1024 * 1024       # v7x-class (64 MiB / TC)
    return {
        "vmem_limit": (vmem_cap * 3) // 4,          # leave headroom vs physical
        "tm_cap": 256 if small_vmem else 512,       # row tiles (LN+QKV, proj+MLP)
        "tq_cap": 256,                              # attention query tile
        "tk_cap": 256 if small_vmem else 512,       # attention KV tile
        "thf_cap": 2048,                            # MLP hidden-dim tile
    }


def _cparams(sem, hw):
    return pltpu.CompilerParams(
        dimension_semantics=sem,
        vmem_limit_bytes=int(hw["vmem_limit"]),
    )


def _tile(n, cap):
    # cap is a multiple of 8 so boundary blocks satisfy the (8,128) rule.
    return n if n <= cap else cap


def _divisor_tile(n, cap, align=1):
    # Largest divisor of n that is <= cap and (a multiple of `align` or == n).
    # Divisibility avoids padded reduction elements (softmax keys / MLP hidden
    # units) corrupting valid rows; falls back to the full extent.
    for t in range(min(n, cap), 0, -1):
        if n % t == 0 and (t == n or t % align == 0):
            return t
    return n


def _const_spec(shape, index_map):
    # Constant-index blocks (weights/biases/LN params): single-buffer them —
    # the second pipeline buffer is pure VMEM waste. Guarded for API support.
    if hasattr(pl, "Buffered"):
        try:
            return pl.BlockSpec(shape, index_map, pipeline_mode=pl.Buffered(1))
        except Exception:
            pass
    return pl.BlockSpec(shape, index_map)


# ----------------------------------------------------------------------------
# Small math helpers (run on VMEM values inside kernels)
# ----------------------------------------------------------------------------
def _layernorm(x, g, b, eps=1e-5):
    # PyTorch nn.LayerNorm: biased variance, eps=1e-5, f32 stats.
    mu = jnp.mean(x, axis=-1, keepdims=True)
    var = jnp.mean((x - mu) * (x - mu), axis=-1, keepdims=True)
    return (x - mu) * jax.lax.rsqrt(var + eps) * g + b


def _gelu_tanh(x):
    # TODO(synk): tanh-form GELU (EUP tanh) instead of nn.GELU's exact erf —
    # ~1e-3 max deviation, but removes ~20 VALU ops/element of the (TM,THf)
    # activation which would otherwise saturate the VALU slot.
    c = math.sqrt(2.0 / math.pi)
    return 0.5 * x * (1.0 + jnp.tanh(c * (x + 0.044715 * x * x * x)))


def _swap01(x, mode):
    # Leading-axis permute inside VMEM (XLU); avoids an HBM layout round trip.
    if mode == "einshape":
        return pltpu.einshape("abc->bac", x)
    return jnp.swapaxes(x, 0, 1)


# ----------------------------------------------------------------------------
# Probe: can this toolchain/chip do the in-kernel head-major permute?
# (tiny one-off compile; on failure we fall back to XLA head split/merge)
# ----------------------------------------------------------------------------
def _permute_probe_kernel(mode, x_ref, o_ref):
    y = _swap01(x_ref[...], mode)                          # bf16 (T,H,hd)->(H,T,hd)
    o_ref[...] = _swap01(y.astype(jnp.float32), mode).astype(o_ref.dtype)


@lru_cache(maxsize=None)
def _head_permute_mode(t, h, hd):
    modes = (("einshape",) if hasattr(pltpu, "einshape") else ()) + ("swapaxes",)
    for mode in modes:
        try:
            x = jnp.zeros((t, h, hd), jnp.bfloat16)
            fn = pl.pallas_call(
                partial(_permute_probe_kernel, mode),
                out_shape=jax.ShapeDtypeStruct((t, h, hd), jnp.bfloat16))
            jax.jit(fn).lower(x).compile()
            return mode
        except Exception:
            continue
    return None


# ----------------------------------------------------------------------------
# Kernel 1: patch-embed projection with fused pos/temporal embedding adds
#   grid = (B*T, N_tiles)
# ----------------------------------------------------------------------------
def _patch_embed_kernel(x_ref, w_ref, b_ref, pos_ref, tmp_ref, o_ref):
    y = jnp.dot(x_ref[0], w_ref[...], preferred_element_type=jnp.float32)
    y = y + b_ref[...] + pos_ref[...] + tmp_ref[0]
    o_ref[0] = y.astype(o_ref.dtype)


def patch_embed(xp_bf16, w_bf16, b, pos, temp3, T, hw):
    BT, N, Cpp = xp_bf16.shape
    E = w_bf16.shape[1]
    TN = _tile(N, 256)
    return pl.pallas_call(
        _patch_embed_kernel,
        out_shape=jax.ShapeDtypeStruct((BT, N, E), jnp.float32),
        grid=(BT, pl.cdiv(N, TN)),
        in_specs=[
            pl.BlockSpec((1, TN, Cpp), lambda bt, n: (bt, n, 0)),
            _const_spec((Cpp, E), lambda bt, n: (0, 0)),
            _const_spec((1, E), lambda bt, n: (0, 0)),
            pl.BlockSpec((TN, E), lambda bt, n: (n, 0)),
            pl.BlockSpec((1, 1, E), lambda bt, n: (bt % T, 0, 0)),
        ],
        out_specs=pl.BlockSpec((1, TN, E), lambda bt, n: (bt, n, 0)),
        compiler_params=_cparams(("parallel", "parallel"), hw),
    )(xp_bf16, w_bf16, b, pos, temp3)


# ----------------------------------------------------------------------------
# Kernel 2: fused LayerNorm1 + QKV projection (scale folded into q),
#           row-tiled over B*S
# ----------------------------------------------------------------------------
def _ln_qkv_kernel(E, scale, x_ref, g_ref, b_ref, w_ref, qb_ref,
                   q_ref, k_ref, v_ref):
    x = x_ref[...].astype(jnp.float32)
    h = _layernorm(x, g_ref[...], b_ref[...])
    qkv = jnp.dot(h.astype(jnp.bfloat16), w_ref[...],
                  preferred_element_type=jnp.float32) + qb_ref[...]
    # Fold the softmax scale into q here (once per element, f32) so the
    # attention kernel never touches the [H,TQ,TK] scores with it.
    q_ref[...] = (qkv[:, 0 * E:1 * E] * scale).astype(q_ref.dtype)
    k_ref[...] = qkv[:, 1 * E:2 * E].astype(k_ref.dtype)
    v_ref[...] = qkv[:, 2 * E:3 * E].astype(v_ref.dtype)


def _ln_qkv_call(x2d, blk, scale, hw):
    M, E = x2d.shape
    TM = _tile(M, hw["tm_cap"])
    bf16 = jnp.bfloat16
    sds = jax.ShapeDtypeStruct((M, E), bf16)
    spec = pl.BlockSpec((TM, E), lambda i: (i, 0))
    return pl.pallas_call(
        partial(_ln_qkv_kernel, E, scale),
        out_shape=(sds, sds, sds),
        grid=(pl.cdiv(M, TM),),
        in_specs=[
            pl.BlockSpec((TM, E), lambda i: (i, 0)),
            _const_spec((1, E), lambda i: (0, 0)),
            _const_spec((1, E), lambda i: (0, 0)),
            _const_spec((E, 3 * E), lambda i: (0, 0)),
            _const_spec((1, 3 * E), lambda i: (0, 0)),
        ],
        out_specs=(spec, spec, spec),
        compiler_params=_cparams(("parallel",), hw),
    )(x2d, blk['ln1_g'], blk['ln1_b'], blk['qkv_w'], blk['qkv_b'])


# ----------------------------------------------------------------------------
# Kernel 3: head-batched flash attention (online softmax over KV tiles)
#   grid = (q_tiles, B, kv_tiles), KV axis "arbitrary" (accumulators in VMEM)
#   permute_mode is None  -> blocks are already head-major [1,H,T,hd]
#   permute_mode is a str -> blocks are [1,T,H,hd]; permute in VMEM
# ----------------------------------------------------------------------------
def _attn_flash_kernel(permute_mode, q_ref, k_ref, v_ref, o_ref,
                       m_sc, l_sc, acc_sc):
    kv_step = pl.program_id(2)

    @pl.when(kv_step == 0)
    def _():
        m_sc[...] = jnp.full(m_sc.shape, -jnp.inf, m_sc.dtype)
        l_sc[...] = jnp.zeros(l_sc.shape, l_sc.dtype)
        acc_sc[...] = jnp.zeros(acc_sc.shape, acc_sc.dtype)

    if permute_mode is None:
        q, k, v = q_ref[0], k_ref[0], v_ref[0]             # (H, T, hd)
    else:
        q = _swap01(q_ref[0], permute_mode)                # (T,H,hd) -> (H,T,hd)
        k = _swap01(k_ref[0], permute_mode)
        v = _swap01(v_ref[0], permute_mode)

    s = jnp.einsum('hqd,hkd->hqk', q, k, preferred_element_type=jnp.float32)

    m_prev = m_sc[...]
    m_new = jnp.maximum(m_prev, jnp.max(s, axis=-1, keepdims=True))
    alpha = jnp.exp(m_prev - m_new)
    p = jnp.exp(s - m_new)
    l_sc[...] = alpha * l_sc[...] + jnp.sum(p, axis=-1, keepdims=True)
    acc_sc[...] = alpha * acc_sc[...] + jnp.einsum(
        'hqk,hkd->hqd', p.astype(v.dtype), v, preferred_element_type=jnp.float32)
    m_sc[...] = m_new

    @pl.when(kv_step == pl.num_programs(2) - 1)
    def _():
        # Normalize AFTER the PV matmul: [H,TQ,hd] instead of [H,TQ,TK].
        ctx = acc_sc[...] * pl.reciprocal(l_sc[...], approx=True)
        if permute_mode is None:
            o_ref[0] = ctx.astype(o_ref.dtype)
        else:
            o_ref[0] = _swap01(ctx, permute_mode).astype(o_ref.dtype)


def _attention_call(q2d, k2d, v2d, B, S, H, hd, hw):
    bf16 = jnp.bfloat16
    TQ = _tile(S, hw["tq_cap"])
    TK = _divisor_tile(S, hw["tk_cap"], align=8)   # must divide S (no key padding)
    nq, nk = pl.cdiv(S, TQ), S // TK
    scratch = [pltpu.VMEM((H, TQ, 1), jnp.float32),     # running max
               pltpu.VMEM((H, TQ, 1), jnp.float32),     # running denominator
               pltpu.VMEM((H, TQ, hd), jnp.float32)]    # running accumulator
    sem = ("parallel", "parallel", "arbitrary")

    mode = _head_permute_mode(TQ, H, hd)
    if mode is not None:
        # No HBM head split/merge: q/k/v/ctx stay [B,S,H,hd] (free reshapes).
        q4 = q2d.reshape(B, S, H, hd)
        k4 = k2d.reshape(B, S, H, hd)
        v4 = v2d.reshape(B, S, H, hd)
        out = pl.pallas_call(
            partial(_attn_flash_kernel, mode),
            out_shape=jax.ShapeDtypeStruct((B, S, H, hd), bf16),
            grid=(nq, B, nk),
            in_specs=[
                pl.BlockSpec((1, TQ, H, hd), lambda qi, b, kv: (b, qi, 0, 0)),
                pl.BlockSpec((1, TK, H, hd), lambda qi, b, kv: (b, kv, 0, 0)),
                pl.BlockSpec((1, TK, H, hd), lambda qi, b, kv: (b, kv, 0, 0)),
            ],
            out_specs=pl.BlockSpec((1, TQ, H, hd), lambda qi, b, kv: (b, qi, 0, 0)),
            scratch_shapes=scratch,
            compiler_params=_cparams(sem, hw),
        )(q4, k4, v4)
        return out.reshape(B * S, H * hd)

    # Fallback: head-major HBM layout via XLA transposes (known-good path).
    def to_heads(a):
        return a.reshape(B, S, H, hd).transpose(0, 2, 1, 3)

    qh, kh, vh = to_heads(q2d), to_heads(k2d), to_heads(v2d)
    out = pl.pallas_call(
        partial(_attn_flash_kernel, None),
        out_shape=jax.ShapeDtypeStruct((B, H, S, hd), bf16),
        grid=(nq, B, nk),
        in_specs=[
            pl.BlockSpec((1, H, TQ, hd), lambda qi, b, kv: (b, 0, qi, 0)),
            pl.BlockSpec((1, H, TK, hd), lambda qi, b, kv: (b, 0, kv, 0)),
            pl.BlockSpec((1, H, TK, hd), lambda qi, b, kv: (b, 0, kv, 0)),
        ],
        out_specs=pl.BlockSpec((1, H, TQ, hd), lambda qi, b, kv: (b, 0, qi, 0)),
        scratch_shapes=scratch,
        compiler_params=_cparams(sem, hw),
    )(qh, kh, vh)
    return out.transpose(0, 2, 1, 3).reshape(B * S, H * hd)


# ----------------------------------------------------------------------------
# Kernel 4: attn-proj + residual + LayerNorm2 + GELU-MLP (Hf-tiled) + residual
#           (+ optional fused final LayerNorm)
#   grid = (M_tiles, Hf_tiles); fc2 partials accumulated in f32 scratch
# ----------------------------------------------------------------------------
def _proj_mlp_kernel(apply_final_ln,
                     x_ref, ctx_ref, pw_ref, pb_ref, g2_ref, b2_ref,
                     f1w_ref, f1b_ref, f2w_ref, f2b_ref, gf_ref, bf_ref,
                     o_ref, h_sc, x1_sc, acc_sc):
    j = pl.program_id(1)

    @pl.when(j == 0)
    def _():
        # TODO(synk): attn_drop / proj_drop / drop are p=0.0 Dropout -> identity.
        x = x_ref[...].astype(jnp.float32)
        attn = jnp.dot(ctx_ref[...], pw_ref[...],
                       preferred_element_type=jnp.float32) + pb_ref[...]
        x1 = x + attn
        x1_sc[...] = x1
        h_sc[...] = _layernorm(x1, g2_ref[...], b2_ref[...]).astype(h_sc.dtype)
        acc_sc[...] = jnp.zeros(acc_sc.shape, acc_sc.dtype)

    m1 = jnp.dot(h_sc[...], f1w_ref[...],
                 preferred_element_type=jnp.float32) + f1b_ref[...]
    m1 = _gelu_tanh(m1)
    acc_sc[...] += jnp.dot(m1.astype(jnp.bfloat16), f2w_ref[...],
                           preferred_element_type=jnp.float32)

    @pl.when(j == pl.num_programs(1) - 1)
    def _():
        out = x1_sc[...] + acc_sc[...] + f2b_ref[...]
        if apply_final_ln:
            out = _layernorm(out, gf_ref[...], bf_ref[...])
        o_ref[...] = out.astype(o_ref.dtype)


def _proj_mlp_call(x2d, ctx2d, blk, norm_g, norm_b, apply_final_ln, hw):
    M, E = x2d.shape
    Hf = blk['fc1_w'].shape[1]
    TM = _tile(M, hw["tm_cap"])
    THf = _divisor_tile(Hf, hw["thf_cap"], align=128)   # must divide Hf
    return pl.pallas_call(
        partial(_proj_mlp_kernel, apply_final_ln),
        out_shape=jax.ShapeDtypeStruct((M, E), x2d.dtype),
        grid=(pl.cdiv(M, TM), Hf // THf),
        in_specs=[
            pl.BlockSpec((TM, E), lambda i, j: (i, 0)),       # residual x
            pl.BlockSpec((TM, E), lambda i, j: (i, 0)),       # attention context
            _const_spec((E, E), lambda i, j: (0, 0)),          # proj W
            _const_spec((1, E), lambda i, j: (0, 0)),          # proj b
            _const_spec((1, E), lambda i, j: (0, 0)),          # ln2 gamma
            _const_spec((1, E), lambda i, j: (0, 0)),          # ln2 beta
            pl.BlockSpec((E, THf), lambda i, j: (0, j)),       # fc1 W chunk
            pl.BlockSpec((1, THf), lambda i, j: (0, j)),       # fc1 b chunk
            pl.BlockSpec((THf, E), lambda i, j: (j, 0)),       # fc2 W chunk
            _const_spec((1, E), lambda i, j: (0, 0)),          # fc2 b
            _const_spec((1, E), lambda i, j: (0, 0)),          # final-norm gamma
            _const_spec((1, E), lambda i, j: (0, 0)),          # final-norm beta
        ],
        out_specs=pl.BlockSpec((TM, E), lambda i, j: (i, 0)),
        scratch_shapes=[pltpu.VMEM((TM, E), jnp.bfloat16),     # LN2 output
                        pltpu.VMEM((TM, E), jnp.float32),      # x + attn
                        pltpu.VMEM((TM, E), jnp.float32)],     # fc2 accumulator
        compiler_params=_cparams(("parallel", "arbitrary"), hw),
    )(x2d, ctx2d,
      blk['proj_w'], blk['proj_b'], blk['ln2_g'], blk['ln2_b'],
      blk['fc1_w'], blk['fc1_b'], blk['fc2_w'], blk['fc2_b'],
      norm_g, norm_b)


# ----------------------------------------------------------------------------
# Fallback: tiled LayerNorm (only used if depth == 0)
# ----------------------------------------------------------------------------
def _ln_only_kernel(x_ref, g_ref, b_ref, o_ref):
    o_ref[...] = _layernorm(
        x_ref[...].astype(jnp.float32), g_ref[...], b_ref[...]
    ).astype(o_ref.dtype)


def layernorm_call(x2d, g, b, hw):
    M, E = x2d.shape
    TM = _tile(M, 1024)
    return pl.pallas_call(
        _ln_only_kernel,
        out_shape=jax.ShapeDtypeStruct((M, E), x2d.dtype),
        grid=(pl.cdiv(M, TM),),
        in_specs=[
            pl.BlockSpec((TM, E), lambda i: (i, 0)),
            _const_spec((1, E), lambda i: (0, 0)),
            _const_spec((1, E), lambda i: (0, 0)),
        ],
        out_specs=pl.BlockSpec((TM, E), lambda i: (i, 0)),
        compiler_params=_cparams(("parallel",), hw),
    )(x2d, g, b)


# ----------------------------------------------------------------------------
# One transformer block (3 tiled pallas_calls)
# ----------------------------------------------------------------------------
def transformer_block(x2d, blk, norm_g, norm_b, B, S, num_heads,
                      apply_final_ln, hw):
    M, E = x2d.shape
    hd = E // num_heads
    scale = float(hd ** -0.5)

    q2d, k2d, v2d = _ln_qkv_call(x2d, blk, scale, hw)
    ctx2d = _attention_call(q2d, k2d, v2d, B, S, num_heads, hd, hw)
    return _proj_mlp_call(x2d, ctx2d, blk, norm_g, norm_b, apply_final_ln, hw)


# ----------------------------------------------------------------------------
# TargetEncoder forward (JAX glue around the Pallas kernels)
# ----------------------------------------------------------------------------
def target_encoder_forward(x, params, cfg):
    hw = _hw_config()
    if x.ndim == 4:
        x = x[:, None]
    B, T, C, H, W = x.shape
    P = cfg['patch_size']
    Gh, Gw = H // P, W // P
    N = Gh * Gw
    E = cfg['embed_dim']
    num_heads = cfg['num_heads']

    # im2col: [B,T,C,H,W] -> [B*T, N, C*P*P]  (bf16 halves HBM traffic)
    xp = (x.reshape(B, T, C, Gh, P, Gw, P)
            .transpose(0, 1, 3, 5, 2, 4, 6)
            .reshape(B * T, N, C * P * P)).astype(jnp.bfloat16)

    pos = params['pos_embed'].reshape(-1, E)[:N].astype(jnp.float32)        # [N, E]
    # TODO(synk): temporal_embed is hard-capped at 16 frames (T <= 16), as in the original.
    temp3 = params['temporal_embed'].reshape(-1, 1, E).astype(jnp.float32)  # [16, 1, E]

    y = patch_embed(xp, params['patch_w'], params['patch_b'],
                    pos, temp3, T, hw)                                      # [B*T, N, E] f32

    S = T * N
    x2d = y.reshape(B * S, E)

    nblocks = len(params['blocks'])
    for li, blk in enumerate(params['blocks']):
        x2d = transformer_block(x2d, blk, params['norm_g'], params['norm_b'],
                                B, S, num_heads,
                                apply_final_ln=(li == nblocks - 1), hw=hw)
    if nblocks == 0:
        x2d = layernorm_call(x2d, params['norm_g'], params['norm_b'], hw)

    return x2d.reshape(B, T, N, E)


# ----------------------------------------------------------------------------
# Deterministic synthetic parameter init (shapes from TargetEncoder.__init__)
# Matmul weights are stored in bf16 once (no per-forward casts); biases,
# LayerNorm params and embeddings stay f32.
# ----------------------------------------------------------------------------
def init_params(key, cfg):
    E = cfg['embed_dim']
    C = cfg['in_chans']
    P = cfg['patch_size']
    N = (cfg['img_size'] // P) ** 2
    Hf = int(E * cfg['mlp_ratio'])
    depth = cfg['depth']
    bf16 = jnp.bfloat16

    def nrm(k, shape, std=0.02):
        return (std * jax.random.normal(k, shape, jnp.float32)).astype(bf16)

    keys = iter(jax.random.split(key, 4 + depth))
    params = {
        # Conv3d(in_chans, E, kernel=(1,P,P)) flattened to [C*P*P, E]
        'patch_w': nrm(next(keys), (C * P * P, E)),
        'patch_b': jnp.zeros((1, E), jnp.float32),
        'pos_embed': (0.02 * jax.random.truncated_normal(
            next(keys), -2.0, 2.0, (1, 1, N, E), jnp.float32)),
        'temporal_embed': (0.02 * jax.random.truncated_normal(
            next(keys), -2.0, 2.0, (1, 16, 1, E), jnp.float32)),
        'norm_g': jnp.ones((1, E), jnp.float32),
        'norm_b': jnp.zeros((1, E), jnp.float32),
        'blocks': [],
    }
    for _ in range(depth):
        ks = iter(jax.random.split(next(keys), 4))
        params['blocks'].append({
            'ln1_g': jnp.ones((1, E), jnp.float32),
            'ln1_b': jnp.zeros((1, E), jnp.float32),
            'qkv_w': nrm(next(ks), (E, 3 * E)),          # qkv_bias=True
            'qkv_b': jnp.zeros((1, 3 * E), jnp.float32),
            'proj_w': nrm(next(ks), (E, E)),
            'proj_b': jnp.zeros((1, E), jnp.float32),
            'ln2_g': jnp.ones((1, E), jnp.float32),
            'ln2_b': jnp.zeros((1, E), jnp.float32),
            'fc1_w': nrm(next(ks), (E, Hf)),
            'fc1_b': jnp.zeros((1, Hf), jnp.float32),
            'fc2_w': nrm(next(ks), (Hf, E)),
            'fc2_b': jnp.zeros((1, E), jnp.float32),
        })
    return params


if __name__ == "__main__":
    cfg = dict(img_size=16, patch_size=8, in_chans=3, embed_dim=32,
               depth=2, num_heads=4, mlp_ratio=4.0)
    key = jax.random.PRNGKey(0)
    pkey, xkey = jax.random.split(key)
    params = init_params(pkey, cfg)

    B, T = 2, 2
    x = jax.random.normal(
        xkey, (B, T, cfg['in_chans'], cfg['img_size'], cfg['img_size']), jnp.float32)

    # Run eagerly: each pallas_call compiles on first use, and the trace-time
    # probes (VMEM capacity, in-kernel head-permute support) run outside any
    # enclosing jit trace.
    out = target_encoder_forward(x, params, cfg)
    out = jax.block_until_ready(out)

    N = (cfg['img_size'] // cfg['patch_size']) ** 2
    assert out.shape == (B, T, N, cfg['embed_dim']), out.shape
    assert bool(jnp.all(jnp.isfinite(out)))
    print("KERNEL_OK")
</pallas_src>

<mosaic_0001>
module attributes {stable_mosaic.version = 11 : i64} {
  func.func @_patch_embed_kernel(%arg0: i32, %arg1: i32, %arg2: memref<1x4x192xbf16, #tpu.memory_space<vmem>>, %arg3: memref<192x32xbf16, #tpu.memory_space<vmem>>, %arg4: memref<1x32xf32, #tpu.memory_space<vmem>>, %arg5: memref<4x32xf32, #tpu.memory_space<vmem>>, %arg6: memref<1x1x32xf32, #tpu.memory_space<vmem>>, %arg7: memref<1x4x32xf32, #tpu.memory_space<vmem>>) attributes {dimension_semantics = [#tpu.dimension_semantics<parallel>, #tpu.dimension_semantics<parallel>], iteration_bounds = array<i64: 4, 1>, scalar_prefetch = 0 : i64, scratch_operands = 0 : i64, tpu.core_type = #tpu.core_type<tc>, window_params = [{transform_indices = @transform_0, window_bounds = array<i64: 1, 4, 192>}, {pipeline_mode = #tpu.pipeline_mode<synchronous>, transform_indices = @transform_1, window_bounds = array<i64: 192, 32>}, {pipeline_mode = #tpu.pipeline_mode<synchronous>, transform_indices = @transform_2, window_bounds = array<i64: 1, 32>}, {transform_indices = @transform_3, window_bounds = array<i64: 4, 32>}, {transform_indices = @transform_4, window_bounds = array<i64: 1, 1, 32>}, {transform_indices = @transform_5, window_bounds = array<i64: 1, 4, 32>}]} {
    %c0 = arith.constant 0 : index
    %c0_0 = arith.constant 0 : index
    %c0_1 = arith.constant 0 : index
    %0 = vector.load %arg2[%c0, %c0_0, %c0_1] : memref<1x4x192xbf16, #tpu.memory_space<vmem>>, vector<1x4x192xbf16>
    %1 = vector.shape_cast %0 : vector<1x4x192xbf16> to vector<4x192xbf16>
    %c0_2 = arith.constant 0 : index
    %c0_3 = arith.constant 0 : index
    %2 = vector.load %arg3[%c0_2, %c0_3] : memref<192x32xbf16, #tpu.memory_space<vmem>>, vector<192x32xbf16>
    %cst = arith.constant dense<0.000000e+00> : vector<4x32xf32>
    %3 = tpu.matmul %1, %2, %cst {dimension_numbers = #tpu.dot_dimension_numbers<[1], [0], [0], [1], [0, 0, 1, 1], [], []>} : vector<4x192xbf16>, vector<192x32xbf16>, vector<4x32xf32> -> vector<4x32xf32>
    %c0_4 = arith.constant 0 : index
    %c0_5 = arith.constant 0 : index
    %4 = vector.load %arg4[%c0_4, %c0_5] : memref<1x32xf32, #tpu.memory_space<vmem>>, vector<1x32xf32>
    %5 = vector.broadcast %4 : vector<1x32xf32> to vector<4x32xf32>
    %6 = arith.addf %3, %5 : vector<4x32xf32>
    %c0_6 = arith.constant 0 : index
    %c0_7 = arith.constant 0 : index
    %7 = vector.load %arg5[%c0_6, %c0_7] : memref<4x32xf32, #tpu.memory_space<vmem>>, vector<4x32xf32>
    %8 = arith.addf %6, %7 : vector<4x32xf32>
    %c0_8 = arith.constant 0 : index
    %c0_9 = arith.constant 0 : index
    %c0_10 = arith.constant 0 : index
    %9 = vector.load %arg6[%c0_8, %c0_9, %c0_10] : memref<1x1x32xf32, #tpu.memory_space<vmem>>, vector<1x1x32xf32>
    %10 = vector.shape_cast %9 : vector<1x1x32xf32> to vector<1x32xf32>
    %11 = vector.broadcast %10 : vector<1x32xf32> to vector<4x32xf32>
    %12 = arith.addf %8, %11 : vector<4x32xf32>
    %c0_11 = arith.constant 0 : index
    %c0_12 = arith.constant 0 : index
    %c0_13 = arith.constant 0 : index
    %13 = vector.load %arg7[%c0_11, %c0_12, %c0_13] : memref<1x4x32xf32, #tpu.memory_space<vmem>>, vector<1x4x32xf32>
    %14 = vector.shape_cast %13 : vector<1x4x32xf32> to vector<4x32xf32>
    %15 = vector.shape_cast %12 : vector<4x32xf32> to vector<1x4x32xf32>
    tpu.vector_store %arg7[%c0_11, %c0_12, %c0_13], %15 {strides = array<i32>} : memref<1x4x32xf32, #tpu.memory_space<vmem>>, vector<1x4x32xf32>,
    return
  }
  func.func @transform_0(%arg0: i32, %arg1: i32) -> (i32, i32, i32) {
    %c0_i32 = arith.constant 0 : i32
    %c0_i32_0 = arith.constant 0 : i32
    return %arg0, %arg1, %c0_i32 : i32, i32, i32
  }
  func.func @transform_1(%arg0: i32, %arg1: i32) -> (i32, i32) {
    %c0_i32 = arith.constant 0 : i32
    %c0_i32_0 = arith.constant 0 : i32
    %c0_i32_1 = arith.constant 0 : i32
    return %c0_i32, %c0_i32_0 : i32, i32
  }
  func.func @transform_2(%arg0: i32, %arg1: i32) -> (i32, i32) {
    %c0_i32 = arith.constant 0 : i32
    %c0_i32_0 = arith.constant 0 : i32
    %c0_i32_1 = arith.constant 0 : i32
    return %c0_i32, %c0_i32_0 : i32, i32
  }
  func.func @transform_3(%arg0: i32, %arg1: i32) -> (i32, i32) {
    %c0_i32 = arith.constant 0 : i32
    %c0_i32_0 = arith.constant 0 : i32
    return %arg1, %c0_i32 : i32, i32
  }
  func.func @transform_4(%arg0: i32, %arg1: i32) -> (i32, i32, i32) {
    %c2_i32 = arith.constant 2 : i32
    %c0_i32 = arith.constant 0 : i32
    %0 = arith.cmpi eq, %c2_i32, %c0_i32 : i32
    %c1_i32 = arith.constant 1 : i32
    %1 = arith.select %0, %c1_i32, %c2_i32 : i32
    %2 = arith.remsi %arg0, %1 : i32
    %c0_i32_0 = arith.constant 0 : i32
    %3 = arith.cmpi ne, %2, %c0_i32_0 : i32
    %c0_i32_1 = arith.constant 0 : i32
    %4 = arith.cmpi slt, %2, %c0_i32_1 : i32
    %c0_i32_2 = arith.constant 0 : i32
    %5 = arith.cmpi slt, %1, %c0_i32_2 : i32
    %6 = arith.xori %4, %5 : i1
    %7 = arith.andi %6, %3 : i1
    %8 = arith.addi %2, %1 : i32
    %9 = arith.select %7, %8, %2 : i32
    %c0_i32_3 = arith.constant 0 : i32
    %c0_i32_4 = arith.constant 0 : i32
    %c0_i32_5 = arith.constant 0 : i32
    return %9, %c0_i32_3, %c0_i32_4 : i32, i32, i32
  }
  func.func @transform_5(%arg0: i32, %arg1: i32) -> (i32, i32, i32) {
    %c0_i32 = arith.constant 0 : i32
    %c0_i32_0 = arith.constant 0 : i32
    return %arg0, %arg1, %c0_i32 : i32, i32, i32
  }
}

</mosaic_0001>

<bundles_post_ra>
// kernel: tpu_custom_call.1
= control target key start
LH: loop header
LB: loop body
LE: loop exit
PB: predicated region body
PF: predicated region fallthrough
CT: control target
= control target key end

     0   :  { %s1555_s0 = inlined_call_operand.hbm [shape: bf16[4,4,192], index: 0, kind: input, shape index: {}]   ;;  %s1556_s1 = inlined_call_operand.hbm [shape: bf16[192,32], index: 1, kind: input, shape index: {}]   ;;  %s1557_s2 = inlined_call_operand.hbm [shape: f32[1,32], index: 2, kind: input, shape index: {}]   ;;  %s1558_s3 = inlined_call_operand.hbm [shape: f32[4,32], index: 3, kind: input, shape index: {}]   ;;  %s1559_s4 = inlined_call_operand.hbm [shape: f32[16,1,32], index: 4, kind: input, shape index: {}]   ;;  %s1560_s5 = inlined_call_operand.hbm [shape: f32[4,4,32], index: 5, kind: output, shape index: {}]  }
   0x1   :  { %1573 = sst [smem:[#allocation21_spill]] %s1556_s1 }
   0x2   :  { %1574 = sst [smem:[#allocation22_spill]] %s1560_s5 }
   0x3   :  { %10 = vsyncpa [#allocation3], 0 }
   0x4   :  { %12 = vsyncpa [#allocation3 + $0x1], 0 }
   0x5   :  { %13 = vsyncpa [#allocation6], 0 }
   0x6   :  { %14 = vsyncpa [#allocation9], 0 }
   0x7   :  { %15 = vsyncpa [#allocation4], 0 }
   0x8   :  { %17 = vsyncpa [#allocation4 + $0x1], 0  ;;  %s1188_s18 = smov 0   ;;  %s1190_s19 = smov 0  }
   0x9   :  { %s1192_s20 = smov 0   ;;  %s1194_s21 = smov 0  }
   0xa   :  { %s1196_s22 = smov 0   ;;  %s1198_s23 = smov 0  }
   0xb   :  { %s1200_s24 = smov 0   ;;  %s1202_s25 = smov 0  }
   0xc   :  { %s1204_s26 = smov 0  }
   0xd LB: > { %1575 = sst [smem:[#allocation17_spill]] %s1127_s21  ;;  %s1234_s27 = sadd.s32 4294967295, %s1147_s26   ;;  %s1147_s26 = sphi %s1204_s26, %s23_s26   ;;  %s1143_s25 = sphi %s1202_s25, %s1615_s25   ;;  %s1139_s24 = sphi %s1200_s24, %s1614_s24   ;;  %s1135_s23 = sphi %s1198_s23, %s1608_s23   ;;  %s1131_s22 = sphi %s1196_s22, %s1613_s22   ;;  %s1127_s21 = sphi %s1194_s21, %s1612_s21   ;;  %s1123_s20 = sphi %s1192_s20, %s1611_s20   ;;  %s1119_s19 = sphi %s1190_s19, %s1610_s19   ;;  %s1115_s18 = sphi %s1188_s18, %s1609_s18  }
   0xe   : > { %1576 = sst [smem:[#allocation18_spill]] %s1135_s23  ;;  %p709_p0 = scmp.ge.s32.totalorder %s1147_s26, 1 }
   0xf   : > { %p1561_p1 = scmp.eq.s32.totalorder %s1234_s27, 0  ;;  %p214_p2 = scmp.lt.s32.totalorder %s1147_s26, 5 }
  0x10   : > { %s1149_s29 = smov [#allocation5]   ;;  %s1579_s1 = sld [smem:[#allocation21_spill]] }
  0x11   : > { %p1239_p3 = pnand %p709_p0, %p214_p2  ;;  %s226_s30 = sshll.u32 %s1149_s29, 4  ;;  %s227_s30 = int_to_ptr.vmem [resolvable:$true] %s226_s30 }
  0x13   : > { %s1577_s28 = scalar_select %p1239_p3, 1, 0 }
  0x14   : > { %p766_p4 = pneg %p1239_p3 }
  0x16   : > { %p1247_p5 = pnand %p766_p4, %p1561_p1  ;;  %s885_s9 = scalar_lea.hbm %s1579_s1, 1536 }
  0x17   : > { %p886_p6 = scmp.ne.s32.totalorder %s1579_s1, %s885_s9  ;;  %p892_p10 = scmp.lt.u32.totalorder %s885_s9, %s1579_s1 }
  0x18   : > { %s1578_s6 = scalar_select %p1247_p5, 1, 0 }
  0x19   : > { %p1259_p7 = pneg %p1247_p5 }
  0x1b   : > { %p888_p8 = pnand %p1259_p7, %p886_p6 }
  0x1d   : > { %p889_p9 = pneg %p888_p8 }
  0x1f   : > { %p894_p11 = pnand %p892_p10, %p889_p9 }
  0x21   : > { %897 = shalt.err (!%p894_p11)
}
  0x22   : > { %s898_s15 = scalar_lea.vmem %s227_s30, 1536  ;;  %p906_p2 = scmp.lt.s32.totalorder %s227_s30, %s227_s30 }
  0x23   : > { %p899_p12 = scmp.ne.s32.totalorder %s227_s30, %s898_s15  ;;  %p907_p4 = scmp.lt.s32.totalorder %s898_s15, %s898_s15 }
  0x25   : > { %p901_p13 = pnand %p899_p12, %p1259_p7  ;;  %p908_p1 = por %p907_p4, %p906_p2 }
  0x27   : > { %p902_p0 = pneg %p901_p13 }
  0x29   : > { %p909_p3 = pnand %p908_p1, %p902_p0 }
  0x2b   : > { %912 = shalt.err (!%p909_p3)
}
  0x2c   : > { %s1150_s16 = smov 64   ;;  %s1151_s17 = smov 4  }
  0x2d   : > { %769 = dma.hbm_to_vmem [thread:$0]  (!%p1247_p5), %s1579_s1, 1536, %s227_s30, [#allocation6], %s1150_s16, %s1150_s16, %s1151_s17  }
  0x2e   : > { %s702_s8 = sadd.s32 4294967294, %s1147_s26   ;;  %s35_s9 = sadd.s32 1, %s1143_s25 }
  0x2f   : > { %s44_s10 = sadd.s32 1, %s1135_s23  ;;  %p37_p1 = scmp.ge.s32.totalorder %s35_s9, 4 }
  0x30   : > { %p51_p3 = scmp.ne.s32.totalorder %s1135_s23, %s1131_s22  ;;  %p1568_p6 = scmp.eq.s32.totalorder %s1147_s26, 0 }
  0x31   : > { %p57_p8 = scmp.ne.s32.totalorder %s1131_s22, %s1127_s21  ;;  %s1617_s9 = smov (%p37_p1, %s35_s9), 0 }
  0x32   : > { %p1287_p9 = por %p1568_p6, %p51_p3  ;;  %p1582_p10 = scmp.eq.s32.totalorder %s1234_s27, 0 }
  0x33   : > { %s39_s13 = ssub.s32 %s1143_s25, %s1617_s9  ;;  %p201_p12 = scmp.eq.s32.totalorder %s1234_s27, 3 }
  0x34   : > { %p1293_p11 = por %p1582_p10, %p57_p8  ;;  %p42_p13 = scmp.eq.s32.totalorder %s39_s13, 0 }
  0x35   : > { %p207_p0 = scmp.eq.s32.totalorder %s702_s8, 3  ;;  %p1300_p2 = por %p201_p12, %p51_p3 }
  0x36   : > { %s1583_s30 = scalar_select %p1293_p11, 1, 0 }
  0x37   : > { %s1584_s14 = scalar_select %p1300_p2, 1, 0 }
  0x38   : > { %p1567_p4 = scmp.lt.s32.totalorder %s1147_s26, 4  ;;  %p1308_p1 = por %p207_p0, %p57_p8 }
  0x39   : > { %s1306_s15 = scalar_select %p42_p13, %s1135_s23, %s44_s10  }
  0x3a   : > { %s1586_s16 = scalar_select %p1308_p1, 1, 0 }
  0x3b   : > { %1585 = sst [smem:[#allocation19_spill]] %s1306_s15  ;;  %s264_s17 = sand.u32 1, %s1147_s26  }
  0x3c   : > { %1587 = sst [smem:[#allocation20_spill]] %s1586_s16  ;;  %s266_s29 = sand.u32 1, %s1135_s23  }
  0x3d   : > { %s714_s7 = sshll.u32 %s266_s29, 2  ;;  %s747_s1 = sshll.u32 %s1143_s25, 6 }
  0x3e   : > { %s1318_s13 = scalar_lea.hbm %s1555_s0, %s747_s1  ;;  %s268_s8 = scalar_lea.vmem [#allocation2], %s714_s7 }
  0x3f   : > { %s278_s10 = sshll.u32 %s268_s8, 4  ;;  %p1324_p3 = pnand %p1567_p4, %p1287_p9  ;;  %s1328_s10 = int_to_ptr.vmem [resolvable:$true] %s278_s10 }
  0x40   : > { %s1152_s29 = smov [#allocation7]   ;;  %s1332_s1 = scalar_lea.sflag [#allocation3], %s264_s17 }
  0x41   : > { %s1330_s5 = sshll.u32 %s1152_s29, 4  ;;  %s913_s21 = scalar_lea.hbm %s1318_s13, 64  ;;  %s241_s5 = int_to_ptr.vmem [resolvable:$true] %s1330_s5 }
  0x42   : > { %p914_p8 = scmp.ne.s32.totalorder %s1318_s13, %s913_s21  ;;  %p915_p10 = pneg %p1324_p3 }
  0x43   : > { %s918_s8 = scalar_lea.hbm %s1555_s0, 256  ;;  %p919_p13 = scmp.lt.u32.totalorder %s1318_s13, %s1555_s0 }
  0x44   : > { %p916_p12 = pnand %p915_p10, %p914_p8  ;;  %p920_p0 = scmp.lt.u32.totalorder %s918_s8, %s913_s21 }
  0x45   : > { %p922_p6 = scmp.lt.u32.totalorder %s913_s21, %s1318_s13 }
  0x46   : > { %p917_p9 = pneg %p916_p12  ;;  %p921_p4 = por %p920_p0, %p919_p13 }
  0x48   : > { %p923_p1 = por %p922_p6, %p921_p4 }
  0x4a   : > { %p924_p2 = pnand %p923_p1, %p917_p9 }
  0x4c   : > { %927 = shalt.err (!%p924_p2)
}
  0x4d   : > { %s928_s17 = scalar_lea.vmem %s1328_s10, 64  ;;  %s1153_s29 = smov [#allocation2]  }
  0x4e   : > { %p929_p8 = scmp.ne.s32.totalorder %s1328_s10, %s928_s17  ;;  %s933_s11 = sshll.u32 %s1153_s29, 4  ;;  %s934_s11 = int_to_ptr.vmem [resolvable:$false] %s933_s11 }
  0x4f   : > { %s935_s23 = scalar_lea.vmem %s934_s11, 128  ;;  %p936_p5 = scmp.lt.s32.totalorder %s1328_s10, %s934_s11 }
  0x50   : > { %p931_p12 = pnand %p929_p8, %p915_p10  ;;  %p937_p13 = scmp.lt.s32.totalorder %s935_s23, %s928_s17 }
  0x52   : > { %p932_p11 = pneg %p931_p12  ;;  %p938_p0 = por %p937_p13, %p936_p5 }
  0x54   : > { %p939_p6 = pnand %p938_p0, %p932_p11 }
  0x56   : > { %942 = shalt.err (!%p939_p6)
}
  0x57   : > { %779 = dma.hbm_to_vmem [thread:$0]  (!%p1324_p3), %s1318_s13, 64, %s1328_s10, %s1332_s1  }
  0x58   : > { %s943_s7 = scalar_lea.hbm %s1557_s2, 16 }
  0x59   : > { %p944_p2 = scmp.ne.s32.totalorder %s1557_s2, %s943_s7  ;;  %p950_p4 = scmp.lt.u32.totalorder %s943_s7, %s1557_s2 }
  0x5b   : > { %p946_p5 = pnand %p944_p2, %p1259_p7 }
  0x5d   : > { %p947_p11 = pneg %p946_p5 }
  0x5f   : > { %p952_p1 = pnand %p950_p4, %p947_p11 }
  0x61   : > { %955 = shalt.err (!%p952_p1)
}
  0x62   : > { %s956_s11 = scalar_lea.vmem %s241_s5, 16  ;;  %s963_s13 = scalar_lea.vmem %s241_s5, 32 }
  0x63   : > { %p957_p3 = scmp.ne.s32.totalorder %s241_s5, %s956_s11  ;;  %p964_p8 = scmp.lt.s32.totalorder %s241_s5, %s241_s5 }
  0x64   : > { %p965_p12 = scmp.lt.s32.totalorder %s963_s13, %s956_s11 }
  0x65   : > { %p959_p10 = pnand %p957_p3, %p1259_p7 }
  0x66   : > { %p966_p13 = por %p965_p12, %p964_p8 }
  0x67   : > { %p960_p9 = pneg %p959_p10 }
  0x69   : > { %p967_p0 = pnand %p966_p13, %p960_p9 }
  0x6b   : > { %970 = shalt.err (!%p967_p0)
}
  0x6c   : > { %p1589_p6 = scmp.ne.s32.totalorder %s1578_s6, 0  ;;  %s1154_s16 = smov [#allocation8]  }
  0x6d   : > { %s253_s21 = sshll.u32 %s1154_s16, 4  ;;  %s971_s29 = scalar_lea.hbm %s1558_s3, 64  ;;  %s254_s21 = int_to_ptr.vmem [resolvable:$true] %s253_s21 }
  0x6e   : > { %772 = dma.hbm_to_vmem [thread:$0]  (!%p1589_p6), %s1557_s2, 16, %s241_s5, [#allocation6]  }
  0x6f   : > { %p972_p2 = scmp.ne.s32.totalorder %s1558_s3, %s971_s29  ;;  %p978_p4 = scmp.lt.u32.totalorder %s971_s29, %s1558_s3 }
  0x71   : > { %p974_p5 = pnand %p972_p2, %p1259_p7 }
  0x73   : > { %p975_p11 = pneg %p974_p5 }
  0x75   : > { %p980_p1 = pnand %p978_p4, %p975_p11 }
  0x77   : > { %983 = shalt.err (!%p980_p1)
}
  0x78   : > { %s984_s5 = scalar_lea.vmem %s254_s21, 64  ;;  %p992_p8 = scmp.lt.s32.totalorder %s254_s21, %s254_s21 }
  0x79   : > { %p985_p3 = scmp.ne.s32.totalorder %s254_s21, %s984_s5  ;;  %p993_p12 = scmp.lt.s32.totalorder %s984_s5, %s984_s5 }
  0x7b   : > { %p987_p10 = pnand %p985_p3, %p1259_p7  ;;  %p994_p13 = por %p993_p12, %p992_p8 }
  0x7d   : > { %p988_p9 = pneg %p987_p10 }
  0x7f   : > { %p995_p0 = pnand %p994_p13, %p988_p9 }
  0x81   : > { %998 = shalt.err (!%p995_p0)
}
  0x82   : > { %775 = dma.hbm_to_vmem [thread:$0]  (!%p1589_p6), %s1558_s3, 64, %s254_s21, [#allocation9]  }
  0x83   : > { %s136_s12 = ssub.s32 0, %s1143_s25  ;;  %s148_s6 = ssub.s32 0, %s1617_s9 }
  0x84   : > { %s703_s16 = smin.u32 %s1143_s25, %s136_s12  ;;  %s706_s8 = smin.u32 %s148_s6, %s1617_s9 }
  0x85   : > { %s138_s7 = sand.u32 1, %s703_s16   ;;  %s150_s29 = sand.u32 1, %s706_s8  }
  0x86   : > { %s162_s17 = sadd.s32 1, %s1123_s20  ;;  %p705_p7 = scmp.lt.s32.totalorder %s138_s7, 0 }
  0x87   : > { %s145_s15 = sadd.s32 2, %s138_s7  ;;  %p169_p2 = scmp.ne.s32.totalorder %s1123_s20, %s1119_s19 }
  0x88   : > { %s1619_s15 = smov (!%p705_p7, %s145_s15), %s138_s7  ;;  %p1590_p5 = scmp.eq.s32.totalorder %s1147_s26, 0 }
  0x89   : > { %p175_p6 = scmp.ne.s32.totalorder %s1119_s19, %s1115_s18  ;;  %p708_p4 = scmp.lt.s32.totalorder %s150_s29, 0 }
  0x8a   : > { %p1406_p11 = por %p169_p2, %p1590_p5  ;;  %s157_s21 = sadd.s32 2, %s150_s29 }
  0x8b   : > { %p1592_p1 = scmp.eq.s32.totalorder %s1234_s27, 0  ;;  %s287_s5 = sand.u32 1, %s1123_s20  }
  0x8c   : > { %s1621_s21 = smov (!%p708_p4, %s157_s21), %s150_s29  ;;  %s720_s10 = sshll.u32 %s1619_s15, 4 }
  0x8d   : > { %p1414_p3 = por %p175_p6, %p1592_p1  ;;  %s159_s23 = ssub.s32 %s1619_s15, %s1621_s21 }
  0x8e   : > { %s1422_s7 = scalar_lea.hbm %s1559_s4, %s720_s10  ;;  %p160_p10 = scmp.eq.s32.totalorder %s159_s23, 0 }
  0x8f   : > { %s288_s18 = scalar_lea.vmem [#allocation10], %s287_s5  ;;  %p1594_p9 = scmp.lt.s32.totalorder %s1147_s26, 4 }
  0x90   : > { %s307_s6 = sshll.u32 %s288_s18, 4  ;;  %s999_s15 = scalar_lea.hbm %s1422_s7, 16  ;;  %s1424_s6 = int_to_ptr.vmem [resolvable:$true] %s307_s6 }
  0x91   : > { %p1430_p8 = pnand %p1594_p9, %p1406_p11  ;;  %p1000_p12 = scmp.ne.s32.totalorder %s1422_s7, %s999_s15 }
  0x92   : > { %s1435_s29 = scalar_select %p160_p10, %s1123_s20, %s162_s17  }
  0x93   : > { %p1001_p13 = pneg %p1430_p8  ;;  %s1004_s11 = scalar_lea.hbm %s1559_s4, 256 }
  0x94   : > { %p1005_p2 = scmp.lt.u32.totalorder %s1422_s7, %s1559_s4  ;;  %p1006_p5 = scmp.lt.u32.totalorder %s1004_s11, %s999_s15 }
  0x95   : > { %p1002_p0 = pnand %p1001_p13, %p1000_p12  ;;  %p1008_p6 = scmp.lt.u32.totalorder %s999_s15, %s1422_s7 }
  0x96   : > { %p1007_p11 = por %p1006_p5, %p1005_p2 }
  0x97   : > { %p1003_p7 = pneg %p1002_p0 }
  0x98   : > { %p1009_p4 = por %p1008_p6, %p1007_p11 }
  0x9a   : > { %p1010_p1 = pnand %p1009_p4, %p1003_p7 }
  0x9c   : > { %1013 = shalt.err (!%p1010_p1)
}
  0x9d   : > { %s1014_s17 = scalar_lea.vmem %s1424_s6, 16  ;;  %s1155_s12 = smov [#allocation10]  }
  0x9e   : > { %p1015_p10 = scmp.ne.s32.totalorder %s1424_s6, %s1014_s17  ;;  %s1019_s16 = sshll.u32 %s1155_s12, 4  ;;  %s1020_s16 = int_to_ptr.vmem [resolvable:$false] %s1019_s16 }
  0x9f   : > { %s1021_s18 = scalar_lea.vmem %s1020_s16, 32  ;;  %p1022_p0 = scmp.lt.s32.totalorder %s1424_s6, %s1020_s16 }
  0xa0   : > { %p1017_p9 = pnand %p1015_p10, %p1001_p13  ;;  %p1023_p2 = scmp.lt.s32.totalorder %s1021_s18, %s1014_s17 }
  0xa2   : > { %p1018_p12 = pneg %p1017_p9  ;;  %p1024_p5 = por %p1023_p2, %p1022_p0 }
  0xa4   : > { %p1025_p11 = pnand %p1024_p5, %p1018_p12 }
  0xa6   : > { %1028 = shalt.err (!%p1025_p11)
}
  0xa7   : > { %782 = dma.hbm_to_vmem [thread:$0]  (!%p1430_p8), %s1422_s7, 16, %s1424_s6, %s1332_s1  }
  0xa8   : > { %p1596_p7 = scmp.ne.s32.totalorder %s1577_s28, 0 }
  0xa9   : > { %s318_s15 = sand.u32 (!%p1596_p7), 1, %s1234_s27   ;;  %s320_s21 = sand.u32 (!%p1596_p7), 1, %s1131_s22  }
  0xaa   : > { %316 = sbr.rel (%p1596_p7) target bundleno = 469 (0x1d5), region = 40  ;;  %s1469_s5 = sshll.u32 (!%p1596_p7), %s320_s21, 2 }
  0xab   : > { %s319_s11 = scalar_lea.sflag (!%p1596_p7), [#allocation3], %s318_s15  ;;  %s322_s10 = scalar_lea.vmem (!%p1596_p7), [#allocation2], %s1469_s5 }
  0xac   : > { %p1597_p13 = scmp.ne.s32.totalorder (!%p1596_p7), %s1583_s30, 0 }
  0xb1   : > { %1094 = dma.done.wait (%p1597_p13), %s319_s11, 64  }
  0xb2   : > { %1096 = vsyncadd (%p1597_p13), %s319_s11, 4294967232  ;;  %p1598_p8 = scmp.eq.s32.totalorder %s1234_s27, 0 }
  0xb4   : > { %1098 = dma.done.wait (%p1598_p8), [#allocation6], 1552   ;;  %p1599_p6 = pmov %p1598_p8 }
  0xb6   : > { %1100 = vsyncadd (%p1599_p6), [#allocation6], 4294965744  ;;  %p1600_p4 = pmov %p1599_p6 }
  0xb8   : > { %1102 = dma.done.wait (%p1600_p4), [#allocation9], 64   ;;  %p1601_p1 = pmov %p1600_p4 }
  0xb9   : > { %s341_s28 = sand.u32 1, %s1119_s19  }
  0xba   : > { %1104 = vsyncadd (%p1601_p1), [#allocation9], 4294967232  ;;  %s1485_s1 = scalar_lea.vmem [#allocation10], %s341_s28 }
  0xbb   : > { %1106 = dma.done.wait (%p1414_p3), %s319_s11, 16  }
  0xbc   : > { %1108 = vsyncadd (%p1414_p3), %s319_s11, 4294967280  ;;  %v1156_v0 = vmov 0   ;;  %v873_v1 = vld [vmem:[#allocation5] sm:$0xff]   ;;  %v874_v2 = vld [vmem:[#allocation5 + $0x8] sm:$0xff]   ;;  %vm500_vm0 = vcmask 523264   ;;  %s744_s27 = sshll.u32 %s1139_s24, 6 }
  0xbd   : > { %504 = vmatprep.subr.bf16.mxu0 %v1156_v0  ;;  %v875_v3 = vld [vmem:[#allocation5 + $0x10] sm:$0xff]   ;;  %v876_v4 = vld [vmem:[#allocation5 + $0x18] sm:$0xff]   ;;  %v877_v7 = vld [vmem:[#allocation5 + $0x20] sm:$0xff]   ;;  %s372_s30 = scalar_lea.vmem [#allocation11], %s1469_s5  ;;  %vm554_vm1 = vcmask 257024   ;;  %s1602_s8 = sld [smem:[#allocation22_spill]] }
  0xbe   : > { %505 = vmatpush1.bf16.msra.mxu0 %v873_v1  ;;  %v728_v5 = vld.sshfl [vmem:[%s322_s10] sm:$0x33 pattern:$0x76325410]  ;;  %v878_v8 = vld [vmem:[#allocation5 + $0x28] sm:$0xff]   ;;  %v879_v9 = vld [vmem:[#allocation5 + $0x30] sm:$0xff]  }
  0xbf   : > { %506 = vmatprep.subr.bf16.mxu0 %v1156_v0  ;;  %v426_v6 = vcombine.high %v728_v5, %v728_v5  ;;  %v880_v10 = vld [vmem:[#allocation5 + $0x38] sm:$0xff]   ;;  %v881_v11 = vld [vmem:[#allocation5 + $0x40] sm:$0xff]   ;;  %v882_v12 = vld [vmem:[#allocation5 + $0x48] sm:$0xff]   ;;  %s571_s13 = sshll.u32 %s372_s30, 4  ;;  %s557_s17 = scalar_lea.sflag [#allocation4], %s320_s21  ;;  %s1499_s13 = int_to_ptr.vmem [resolvable:$true] %s571_s13 }
  0xc0   : > { %v883_v13 = vld [vmem:[#allocation5 + $0x50] sm:$0xff]   ;;  %v884_v14 = vld [vmem:[#allocation5 + $0x58] sm:$0xff]   ;;  %v727_v15 = vld [vmem:[#allocation7] ss:$0 sm:$0xff]  ;;  %s1029_s24 = scalar_lea.vmem %s1499_s13, 64  ;;  %p1603_p10 = scmp.ne.s32.totalorder %s1584_s14, 0 }
  0xc1   : > { %741 = vmatprep.mubr.msk.bf16.mxu0 %vm500_vm0, %v426_v6  ;;  %v544_v17 = vld [vmem:[#allocation8] sm:$0xf]  ;;  %v742_v20 = vld [vmem:[%s1485_s1] ss:$0 sm:$0xff]  ;;  %p1030_p3 = scmp.ne.s32.totalorder %s1499_s13, %s1029_s24  ;;  %s1157_s12 = smov [#allocation11]  }
  0xc2   : > { %507 = vmatpush1.bf16.msra.mxu0 %v874_v2  ;;  %s1033_s16 = sshll.u32 %s1157_s12, 4  ;;  %s1034_s16 = int_to_ptr.vmem [resolvable:$false] %s1033_s16 }
  0xc3   : > { %508 = vmatprep.subr.bf16.mxu0 %v1156_v0  ;;  %s1497_s23 = scalar_lea.hbm %s1602_s8, %s744_s27  ;;  %p1031_p9 = pnand %p1030_p3, %p1603_p10 }
  0xc4   : > { %s1035_s18 = scalar_lea.vmem %s1034_s16, 128  ;;  %p1036_p0 = scmp.lt.s32.totalorder %s1499_s13, %s1034_s16 }
  0xc5   : > { %p1032_p12 = pneg %p1031_p9  ;;  %p1037_p2 = scmp.lt.s32.totalorder %s1035_s18, %s1029_s24 }
  0xc6   : > { %509 = vmatpush1.bf16.msra.mxu0 %v875_v3 }
  0xc7   : > { %510 = vmatprep.subr.bf16.mxu0 %v1156_v0  ;;  %p1038_p5 = por %p1037_p2, %p1036_p0 }
  0xc9   : > { %p1039_p11 = pnand %p1038_p5, %p1032_p12 }
  0xca   : > { %511 = vmatpush1.bf16.msra.mxu0 %v876_v4 }
  0xcb   : > { %512 = vmatprep.subr.bf16.mxu0 %v1156_v0 }
  0xce   : > { %513 = vmatpush1.bf16.msra.mxu0 %v877_v7 }
  0xcf   : > { %514 = vmatprep.subr.bf16.mxu0 %v1156_v0 }
  0xd2   : > { %515 = vmatpush1.bf16.msra.mxu0 %v878_v8 }
  0xd3   : > { %516 = vmatprep.subr.bf16.mxu0 %v1156_v0 }
  0xd6   : > { %517 = vmatpush1.bf16.msra.mxu0 %v879_v9 }
  0xd7   : > { %518 = vmatprep.subr.bf16.mxu0 %v1156_v0 }
  0xda   : > { %519 = vmatpush1.bf16.msra.mxu0 %v880_v10 }
  0xdb   : > { %520 = vmatprep.subr.bf16.mxu0 %v1156_v0 }
  0xde   : > { %521 = vmatpush1.bf16.msra.mxu0 %v881_v11 }
  0xdf   : > { %522 = vmatprep.subr.bf16.mxu0 %v1156_v0 }
  0xe2   : > { %523 = vmatpush1.bf16.msra.mxu0 %v882_v12 }
  0xe3   : > { %524 = vmatprep.subr.bf16.mxu0 %v1156_v0 }
  0xe6   : > { %525 = vmatpush1.bf16.msra.mxu0 %v883_v13 }
  0xe7   : > { %526 = vmatprep.subr.bf16.mxu0 %v1156_v0 }
  0xea   : > { %527 = vmatpush1.bf16.msra.mxu0 %v884_v14 }
  0xed   : > { %537 = vmatmul.mubr.bf16.vlgmr.msra.gmra.mrb[0].mxu0 %v728_v5 }
 0x1c0   : > { %v538_v16 = vpop.f32.mrb[0].mxu0 }
 0x1c1   : > { %v539_v18 = vadd.f32 %v727_v15, %v538_v16  ;;  %v540_v19 = vpop.f32.mrb[1].mxu0 }
 0x1c2   : > { %v541_v21 = vpop.f32.mrb[2].mxu0 }
 0x1c3   : > { %v545_v22 = vadd.f32 %v544_v17, %v539_v18  ;;  %v542_v23 = vpop.f32.mrb[3].mxu0 }
 0x1c5   : > { %v553_v24 = vadd.f32 %v742_v20, %v545_v22 }
 0x1c7   : > { %555 = vst.msk [vmem:[%s372_s30] sm:$0xf] %vm554_vm1, %v553_v24 }
 0x1c8   : > { %1042 = shalt.err (!%p1039_p11)
}
 0x1c9   : > { %s1043_s15 = scalar_lea.hbm %s1497_s23, 64  ;;  %s1047_s11 = scalar_lea.hbm %s1602_s8, 256 }
 0x1ca   : > { %p1044_p7 = scmp.ne.s32.totalorder %s1497_s23, %s1043_s15  ;;  %p1048_p6 = scmp.lt.u32.totalorder %s1497_s23, %s1602_s8 }
 0x1cb   : > { %p1049_p4 = scmp.lt.u32.totalorder %s1047_s11, %s1043_s15  ;;  %p1051_p3 = scmp.lt.u32.totalorder %s1043_s15, %s1497_s23 }
 0x1cc   : > { %p1045_p13 = pnand %p1044_p7, %p1603_p10 }
 0x1cd   : > { %p1050_p1 = por %p1049_p4, %p1048_p6 }
 0x1ce   : > { %p1046_p8 = pneg %p1045_p13 }
 0x1cf   : > { %p1052_p9 = por %p1051_p3, %p1050_p1 }
 0x1d1   : > { %p1053_p12 = pnand %p1052_p9, %p1046_p8 }
 0x1d3   : > { %1056 = shalt.err (!%p1053_p12)
}
 0x1d4   : > { %764 = dma.vmem_to_hbm [thread:$0]  (%p1603_p10), %s1499_s13, 64, %s1497_s23, %s557_s17  }
 0x1d5 PF: > { %s1604_s1 = sld [smem:[#allocation17_spill]]  ;;  %s1605_s27 = sld [smem:[#allocation20_spill]] }
 0x1d6   : > { %p794_p0 = scmp.ge.s32.totalorder %s1147_s26, 2 }
 0x1db   : > { %s583_s30 = sand.u32 1, %s1604_s1   ;;  %p1606_p2 = scmp.ne.s32.totalorder %s1605_s27, 0 }
 0x1dc   : > { %s584_s7 = scalar_lea.sflag [#allocation4], %s583_s30 }
 0x1dd   : > { %p784_p5 = pnand %p794_p0, %p1606_p2 }
 0x1df   : > { %1110 = dma.done.wait (!%p784_p5), %s584_s7, 64  }
 0x1e0   : > { %1112 = vsyncadd (!%p784_p5), %s584_s7, 4294967232  ;;  %s23_s26 = sadd.s32 1, %s1147_s26   ;;  %s1607_s14 = sld [smem:[#allocation18_spill]] }
 0x1e1   : > { %p20_p11 = scmp.ge.s32.totalorder %s23_s26, 6   ;;  %s1608_s23 = sld [smem:[#allocation19_spill]] }
 0x1e2   : > { %s1609_s18 = smov %s1119_s19  ;;  %s1610_s19 = smov %s1123_s20 }
 0x1e3   : > { %s1611_s20 = smov %s1435_s29  ;;  %s1612_s21 = smov %s1131_s22 }
 0x1e4   : > { %s1614_s24 = smov %s1143_s25  ;;  %s1615_s25 = smov %s1617_s9 }
 0x1e5   :  { %22 = sbr.rel (!%p20_p11) target bundleno = 13 (0xd), region = 109 }
 0x1e6   : > { %s1613_s22 = smov %s1607_s14 }
 0x1ec   :  { %589 = vsyncpa [#allocation3], 1 }
 0x1ed   :  { %591 = vsyncpa [#allocation3 + $0x1], 1 }
 0x1ee   :  { %592 = vsyncpa [#allocation6], 1 }
 0x1ef   :  { %593 = vsyncpa [#allocation9], 1 }
 0x1f0   :  { %594 = vsyncpa [#allocation4], 1 }
 0x1f1   :  { %596 = vsyncpa [#allocation4 + $0x1], 1 }

</bundles_post_ra>
